<compile_context>
chip_gen: v7x
topology: tpu7x:2x2x1
jax: 0.10.0
libtpu: 0.0.40
codegen_flags: <defaults>
</compile_context>

<pallas_src>
import functools

import jax
import jax.numpy as jnp
from jax.experimental import pallas as pl
from jax.experimental.pallas import tpu as pltpu

BN_EPS = 1e-5


def _round_up(x, m):
    return (x + m - 1) // m * m


def _pad2d(x, rows, cols):
    r, c = x.shape
    if r == rows and c == cols:
        return x
    return jnp.pad(x, ((0, rows - r), (0, cols - c)))


def _pick_tile(dim_p, max_tile=512):
    """Largest multiple-of-128 tile <= max_tile that divides dim_p (dim_p is a
    multiple of 128)."""
    if dim_p <= max_tile:
        return dim_p
    for cand in (512, 384, 256, 128):
        if cand <= max_tile and dim_p % cand == 0:
            return cand
    return 128


def _srrl_fused_kernel(feat_ref, wt_ref, gb_ref, wc_ref, bc_ref,
                       trans_ref, pred_ref, *, inv_b, true_b, mask_rows):
    """One t_n tile: conv1x1 + BN (training stats) + ReLU, then classifier
    partial-product accumulation.

    feat_ref : (Bp, s_np)  student features (matmul dtype, zero-padded, resident)
    wt_ref   : (s_np, TC)  conv1x1 weight tile, (in, out) layout, matmul dtype
    gb_ref   : (2, TC)     stacked [gamma; beta] BN parameters (f32)
    wc_ref   : (TC, n_cp)  classifier weight tile, (in, out) layout, matmul dtype
    bc_ref   : (1, n_cp)   classifier bias (f32)
    trans_ref: (Bp, TC)    output tile, post BN + ReLU (f32)
    pred_ref : (Bp, n_cp)  resident logits accumulator / output (f32)
    """
    k = pl.program_id(0)

    @pl.when(k == 0)
    def _init():
        pred_ref[...] = jnp.zeros_like(pred_ref)

    # 1x1 conv == matmul; operands already in matmul dtype, f32 MXU accumulate.
    h = jnp.dot(feat_ref[...], wt_ref[...],
                preferred_element_type=jnp.float32)            # (Bp, TC) f32

    # BatchNorm2d, training-mode batch statistics (biased variance, eps=1e-5).
    # Padded batch rows of h are exactly zero, so sums over Bp equal sums over
    # the true batch; divide by the true B.  Variance uses the centered
    # two-pass form; padded rows are masked so they don't contribute mean^2.
    mean = jnp.sum(h, axis=0, keepdims=True) * inv_b            # (1, TC)
    hc = h - mean
    if mask_rows:
        row = jax.lax.broadcasted_iota(jnp.int32, h.shape, 0)
        hc = jnp.where(row < true_b, hc, 0.0)
    var = jnp.sum(hc * hc, axis=0, keepdims=True) * inv_b
    inv_std = jax.lax.rsqrt(var + BN_EPS)                       # EUP slot
    gb = gb_ref[...]
    a = gb[0:1, :] * inv_std                                    # gamma * inv_std
    b = gb[1:2, :] - mean * a                                   # beta - mean*a
    # Padded t_n channels have gamma = beta = 0 -> a = b = 0 -> t == 0 there,
    # so the classifier contraction over the padded t_np axis stays exact.
    t = jnp.maximum(h * a + b, 0.0)                             # (Bp, TC) f32
    trans_ref[...] = t.astype(trans_ref.dtype)

    # Teacher classifier: accumulate this tile's partial product into the
    # resident f32 output (reduction over the t_n grid axis).
    pred_ref[...] += jnp.dot(t.astype(wc_ref.dtype), wc_ref[...],
                             preferred_element_type=jnp.float32)

    @pl.when(k == pl.num_programs(0) - 1)
    def _finalize():
        pred_ref[...] += bc_ref[...]


def prepare_srrl_params(w_transfer, bn_gamma, bn_beta, w_cls, b_cls,
                        matmul_dtype=jnp.bfloat16):
    """One-time parameter prep, hoisted out of the per-step path: lane-dense
    zero padding to multiples of 128, weights transposed to (in, out) layout
    and cast to the matmul dtype, gamma/beta packed into one array."""
    t_n, s_n = w_transfer.shape
    n_cls = w_cls.shape[0]
    s_np, t_np, n_cp = (_round_up(d, 128) for d in (s_n, t_n, n_cls))

    wt = _pad2d(w_transfer.T, s_np, t_np).astype(matmul_dtype)   # (s_np, t_np)
    wc = _pad2d(w_cls.T, t_np, n_cp).astype(matmul_dtype)        # (t_np, n_cp)
    gb = _pad2d(jnp.stack([bn_gamma, bn_beta]).astype(jnp.float32), 2, t_np)
    bc = _pad2d(b_cls.reshape(1, n_cls).astype(jnp.float32), 1, n_cp)
    return {"wt": wt, "gb": gb, "wc": wc, "bc": bc,
            "dims": (s_n, t_n, n_cls), "matmul_dtype": matmul_dtype}


@functools.partial(jax.jit, static_argnames=("t_n", "n_cls", "matmul_dtype"))
def _srrl_forward_impl(feat_s, wt, gb, wc, bc, *, t_n, n_cls, matmul_dtype):
    B = feat_s.shape[0]
    s_np, t_np = wt.shape
    n_cp = wc.shape[1]

    # bf16 packs (16, 128) per vreg -> pad the batch to 16 rows; f32 to 8.
    b_mult = 16 if jnp.dtype(matmul_dtype).itemsize < 4 else 8
    Bp = _round_up(B, b_mult)
    feat_p = _pad2d(feat_s.astype(matmul_dtype), Bp, s_np)

    TC = _pick_tile(t_np, 512)           # t_n reduction tile (multiple of 128)
    n_k = t_np // TC

    # VMEM budget: resident feat + double-buffered weight/param tiles + the
    # two outputs, x2 headroom, floor 16 MiB (compiler scratch), cap 64 MiB so
    # the same request is legal on v5e / v6e / v7x.
    it = jnp.dtype(matmul_dtype).itemsize
    vmem_need = (2 * Bp * s_np * it + 2 * s_np * TC * it + 2 * 2 * TC * 4
                 + 2 * TC * n_cp * it + 2 * n_cp * 4
                 + 2 * Bp * TC * 4 + 2 * Bp * n_cp * 4)
    vmem_limit = int(min(max(2 * vmem_need, 16 * 2 ** 20), 64 * 2 ** 20))

    kernel = functools.partial(_srrl_fused_kernel, inv_b=1.0 / B, true_b=B,
                               mask_rows=(Bp != B))

    trans_p, pred_p = pl.pallas_call(
        kernel,
        out_shape=(jax.ShapeDtypeStruct((Bp, t_np), jnp.float32),
                   jax.ShapeDtypeStruct((Bp, n_cp), jnp.float32)),
        grid=(n_k,),
        in_specs=[
            pl.BlockSpec((Bp, s_np), lambda k: (0, 0)),    # feat (resident)
            pl.BlockSpec((s_np, TC), lambda k: (0, k)),    # conv1x1 weight tile
            pl.BlockSpec((2, TC), lambda k: (0, k)),       # [gamma; beta] tile
            pl.BlockSpec((TC, n_cp), lambda k: (k, 0)),    # classifier weight tile
            pl.BlockSpec((1, n_cp), lambda k: (0, 0)),     # classifier bias
        ],
        out_specs=[
            pl.BlockSpec((Bp, TC), lambda k: (0, k)),      # trans tile
            pl.BlockSpec((Bp, n_cp), lambda k: (0, 0)),    # pred accumulator
        ],
        compiler_params=pltpu.CompilerParams(
            dimension_semantics=("arbitrary",),            # reduction over t_n
            vmem_limit_bytes=vmem_limit),
    )(feat_p, wt, gb, wc, bc)

    trans = trans_p if (Bp == B and t_np == t_n) else trans_p[:B, :t_n]
    pred = pred_p if (Bp == B and n_cp == n_cls) else pred_p[:B, :n_cls]
    return trans, pred


def srrl_forward(feat_s, params):
    s_n, t_n, n_cls = params["dims"]
    del s_n  # implied by feat_s / padded weight shapes
    return _srrl_forward_impl(feat_s, params["wt"], params["gb"], params["wc"],
                              params["bc"], t_n=t_n, n_cls=n_cls,
                              matmul_dtype=params["matmul_dtype"])


def _reference(feat_s, w_transfer, bn_gamma, bn_beta, w_cls, b_cls):
    h = feat_s @ w_transfer.T
    mean = jnp.mean(h, axis=0, keepdims=True)
    var = jnp.mean((h - mean) ** 2, axis=0, keepdims=True)
    y = (h - mean) / jnp.sqrt(var + BN_EPS) * bn_gamma[None, :] + bn_beta[None, :]
    trans = jnp.maximum(y, 0.0)
    pred = trans @ w_cls.T + b_cls[None, :]
    return trans, pred


if __name__ == "__main__":
    B, s_n, t_n, n_cls = 8, 32, 64, 16

    key = jax.random.PRNGKey(0)
    k_feat, k_wt, k_g, k_b, k_wc, k_bc = jax.random.split(key, 6)

    feat_s = jax.random.normal(k_feat, (B, s_n), dtype=jnp.float32)
    # Deterministic synthetic parameters (shapes from the module __init__;
    # cls_t modeled as Linear(t_n, n_cls) with bias).
    w_transfer = jax.random.normal(k_wt, (t_n, s_n), dtype=jnp.float32) * 0.1
    bn_gamma = 1.0 + 0.05 * jax.random.normal(k_g, (t_n,), dtype=jnp.float32)
    bn_beta = 0.05 * jax.random.normal(k_b, (t_n,), dtype=jnp.float32)
    w_cls = jax.random.normal(k_wc, (n_cls, t_n), dtype=jnp.float32) * 0.1
    b_cls = 0.05 * jax.random.normal(k_bc, (n_cls,), dtype=jnp.float32)

    ref_trans, ref_pred = _reference(feat_s, w_transfer, bn_gamma, bn_beta,
                                     w_cls, b_cls)

    # f32 MXU operands: faithful to the PyTorch f32 forward, tight tolerance.
    params32 = prepare_srrl_params(w_transfer, bn_gamma, bn_beta, w_cls, b_cls,
                                   matmul_dtype=jnp.float32)
    trans32, pred32 = srrl_forward(feat_s, params32)
    jax.block_until_ready((trans32, pred32))
    assert trans32.shape == (B, t_n) and pred32.shape == (B, n_cls)
    assert jnp.allclose(trans32, ref_trans, atol=1e-4, rtol=1e-4)
    assert jnp.allclose(pred32, ref_pred, atol=1e-4, rtol=1e-4)

    # bf16 fast path (default): bf16 operands from HBM, f32 MXU accumulation.
    # Looser tolerance: BN over a small batch amplifies bf16 input rounding
    # where the per-channel batch variance happens to be small.
    params16 = prepare_srrl_params(w_transfer, bn_gamma, bn_beta, w_cls, b_cls,
                                   matmul_dtype=jnp.bfloat16)
    trans16, pred16 = srrl_forward(feat_s, params16)
    jax.block_until_ready((trans16, pred16))
    assert trans16.shape == (B, t_n) and pred16.shape == (B, n_cls)
    assert jnp.allclose(trans16, ref_trans, atol=1e-1, rtol=1e-1)
    assert jnp.allclose(pred16, ref_pred, atol=1e-1, rtol=1e-1)

    print("KERNEL_OK")
</pallas_src>

<mosaic_0001>
module attributes {stable_mosaic.version = 11 : i64} {
  func.func @_srrl_fused_kernel(%arg0: i32, %arg1: memref<8x128xf32, #tpu.memory_space<vmem>>, %arg2: memref<128x128xf32, #tpu.memory_space<vmem>>, %arg3: memref<2x128xf32, #tpu.memory_space<vmem>>, %arg4: memref<128x128xf32, #tpu.memory_space<vmem>>, %arg5: memref<1x128xf32, #tpu.memory_space<vmem>>, %arg6: memref<8x128xf32, #tpu.memory_space<vmem>>, %arg7: memref<8x128xf32, #tpu.memory_space<vmem>>) attributes {dimension_semantics = [#tpu.dimension_semantics<arbitrary>], iteration_bounds = array<i64: 1>, scalar_prefetch = 0 : i64, scratch_operands = 0 : i64, tpu.core_type = #tpu.core_type<tc>, window_params = [{pipeline_mode = #tpu.pipeline_mode<synchronous>, transform_indices = @transform_0, window_bounds = array<i64: 8, 128>}, {transform_indices = @transform_1, window_bounds = array<i64: 128, 128>}, {transform_indices = @transform_2, window_bounds = array<i64: 2, 128>}, {transform_indices = @transform_3, window_bounds = array<i64: 128, 128>}, {pipeline_mode = #tpu.pipeline_mode<synchronous>, transform_indices = @transform_4, window_bounds = array<i64: 1, 128>}, {transform_indices = @transform_5, window_bounds = array<i64: 8, 128>}, {pipeline_mode = #tpu.pipeline_mode<synchronous>, transform_indices = @transform_6, window_bounds = array<i64: 8, 128>}]} {
    %c0_i32 = arith.constant 0 : i32
    %0 = arith.cmpi eq, %arg0, %c0_i32 : i32
    %1 = arith.extui %0 : i1 to i32
    %c0_i32_0 = arith.constant 0 : i32
    %2 = arith.cmpi ne, %1, %c0_i32_0 : i32
    scf.if %2 {
      %cst_23 = arith.constant 0.000000e+00 : f32
      %41 = vector.broadcast %cst_23 : f32 to vector<8x128xf32>
      %c0_24 = arith.constant 0 : index
      %c0_25 = arith.constant 0 : index
      %42 = vector.load %arg7[%c0_24, %c0_25] : memref<8x128xf32, #tpu.memory_space<vmem>>, vector<8x128xf32>
      tpu.vector_store %arg7[%c0_24, %c0_25], %41 {strides = array<i32>} : memref<8x128xf32, #tpu.memory_space<vmem>>, vector<8x128xf32>,
    } else {
    }
    %c0 = arith.constant 0 : index
    %c0_1 = arith.constant 0 : index
    %3 = vector.load %arg1[%c0, %c0_1] : memref<8x128xf32, #tpu.memory_space<vmem>>, vector<8x128xf32>
    %c0_2 = arith.constant 0 : index
    %c0_3 = arith.constant 0 : index
    %4 = vector.load %arg2[%c0_2, %c0_3] : memref<128x128xf32, #tpu.memory_space<vmem>>, vector<128x128xf32>
    %cst = arith.constant dense<0.000000e+00> : vector<8x128xf32>
    %5 = tpu.matmul %3, %4, %cst {dimension_numbers = #tpu.dot_dimension_numbers<[1], [0], [0], [1], [0, 0, 1, 1], [], []>} : vector<8x128xf32>, vector<128x128xf32>, vector<8x128xf32> -> vector<8x128xf32>
    %cst_4 = arith.constant dense<0.000000e+00> : vector<128xf32>
    %6 = vector.multi_reduction <add>, %5, %cst_4 [0] : vector<8x128xf32> to vector<128xf32>
    %7 = vector.shape_cast %6 : vector<128xf32> to vector<1x128xf32>
    %cst_5 = arith.constant 1.250000e-01 : f32
    %8 = vector.broadcast %cst_5 : f32 to vector<1x128xf32>
    %9 = arith.mulf %7, %8 : vector<1x128xf32>
    %10 = vector.broadcast %9 : vector<1x128xf32> to vector<8x128xf32>
    %11 = arith.subf %5, %10 : vector<8x128xf32>
    %12 = arith.mulf %11, %11 : vector<8x128xf32>
    %cst_6 = arith.constant dense<0.000000e+00> : vector<128xf32>
    %13 = vector.multi_reduction <add>, %12, %cst_6 [0] : vector<8x128xf32> to vector<128xf32>
    %14 = vector.shape_cast %13 : vector<128xf32> to vector<1x128xf32>
    %cst_7 = arith.constant 1.250000e-01 : f32
    %15 = vector.broadcast %cst_7 : f32 to vector<1x128xf32>
    %16 = arith.mulf %14, %15 : vector<1x128xf32>
    %cst_8 = arith.constant 9.99999974E-6 : f32
    %17 = vector.broadcast %cst_8 : f32 to vector<1x128xf32>
    %18 = arith.addf %16, %17 : vector<1x128xf32>
    %19 = math.rsqrt %18 : vector<1x128xf32>
    %c0_9 = arith.constant 0 : index
    %c0_10 = arith.constant 0 : index
    %20 = vector.load %arg3[%c0_9, %c0_10] : memref<2x128xf32, #tpu.memory_space<vmem>>, vector<2x128xf32>
    %21 = vector.extract_strided_slice %20 {offsets = [0, 0], sizes = [1, 128], strides = [1, 1]} : vector<2x128xf32> to vector<1x128xf32>
    %22 = arith.mulf %21, %19 : vector<1x128xf32>
    %23 = vector.extract_strided_slice %20 {offsets = [1, 0], sizes = [1, 128], strides = [1, 1]} : vector<2x128xf32> to vector<1x128xf32>
    %24 = arith.mulf %9, %22 : vector<1x128xf32>
    %25 = arith.subf %23, %24 : vector<1x128xf32>
    %26 = vector.broadcast %22 : vector<1x128xf32> to vector<8x128xf32>
    %27 = arith.mulf %5, %26 : vector<8x128xf32>
    %28 = vector.broadcast %25 : vector<1x128xf32> to vector<8x128xf32>
    %29 = arith.addf %27, %28 : vector<8x128xf32>
    %cst_11 = arith.constant 0.000000e+00 : f32
    %30 = vector.broadcast %cst_11 : f32 to vector<8x128xf32>
    %31 = arith.maximumf %29, %30 : vector<8x128xf32>
    %c0_12 = arith.constant 0 : index
    %c0_13 = arith.constant 0 : index
    %32 = vector.load %arg6[%c0_12, %c0_13] : memref<8x128xf32, #tpu.memory_space<vmem>>, vector<8x128xf32>
    tpu.vector_store %arg6[%c0_12, %c0_13], %31 {strides = array<i32>} : memref<8x128xf32, #tpu.memory_space<vmem>>, vector<8x128xf32>,
    %c0_14 = arith.constant 0 : index
    %c0_15 = arith.constant 0 : index
    %33 = vector.load %arg7[%c0_14, %c0_15] : memref<8x128xf32, #tpu.memory_space<vmem>>, vector<8x128xf32>
    %c0_16 = arith.constant 0 : index
    %c0_17 = arith.constant 0 : index
    %34 = vector.load %arg4[%c0_16, %c0_17] : memref<128x128xf32, #tpu.memory_space<vmem>>, vector<128x128xf32>
    %cst_18 = arith.constant dense<0.000000e+00> : vector<8x128xf32>
    %35 = tpu.matmul %31, %34, %cst_18 {dimension_numbers = #tpu.dot_dimension_numbers<[1], [0], [0], [1], [0, 0, 1, 1], [], []>} : vector<8x128xf32>, vector<128x128xf32>, vector<8x128xf32> -> vector<8x128xf32>
    %36 = arith.addf %33, %35 : vector<8x128xf32>
    %c0_19 = arith.constant 0 : index
    %c0_20 = arith.constant 0 : index
    %37 = vector.load %arg7[%c0_19, %c0_20] : memref<8x128xf32, #tpu.memory_space<vmem>>, vector<8x128xf32>
    tpu.vector_store %arg7[%c0_19, %c0_20], %36 {strides = array<i32>} : memref<8x128xf32, #tpu.memory_space<vmem>>, vector<8x128xf32>,
    %c0_i32_21 = arith.constant 0 : i32
    %38 = arith.cmpi eq, %arg0, %c0_i32_21 : i32
    %39 = arith.extui %38 : i1 to i32
    %c0_i32_22 = arith.constant 0 : i32
    %40 = arith.cmpi ne, %39, %c0_i32_22 : i32
    scf.if %40 {
      %c0_23 = arith.constant 0 : index
      %c0_24 = arith.constant 0 : index
      %41 = vector.load %arg7[%c0_23, %c0_24] : memref<8x128xf32, #tpu.memory_space<vmem>>, vector<8x128xf32>
      %c0_25 = arith.constant 0 : index
      %c0_26 = arith.constant 0 : index
      %42 = vector.load %arg5[%c0_25, %c0_26] : memref<1x128xf32, #tpu.memory_space<vmem>>, vector<1x128xf32>
      %43 = vector.broadcast %42 : vector<1x128xf32> to vector<8x128xf32>
      %44 = arith.addf %41, %43 : vector<8x128xf32>
      %c0_27 = arith.constant 0 : index
      %c0_28 = arith.constant 0 : index
      %45 = vector.load %arg7[%c0_27, %c0_28] : memref<8x128xf32, #tpu.memory_space<vmem>>, vector<8x128xf32>
      tpu.vector_store %arg7[%c0_27, %c0_28], %44 {strides = array<i32>} : memref<8x128xf32, #tpu.memory_space<vmem>>, vector<8x128xf32>,
    } else {
    }
    return
  }
  func.func @transform_0(%arg0: i32) -> (i32, i32) {
    %c0_i32 = arith.constant 0 : i32
    %c0_i32_0 = arith.constant 0 : i32
    %c0_i32_1 = arith.constant 0 : i32
    return %c0_i32, %c0_i32_0 : i32, i32
  }
  func.func @transform_1(%arg0: i32) -> (i32, i32) {
    %c0_i32 = arith.constant 0 : i32
    %c0_i32_0 = arith.constant 0 : i32
    return %c0_i32, %arg0 : i32, i32
  }
  func.func @transform_2(%arg0: i32) -> (i32, i32) {
    %c0_i32 = arith.constant 0 : i32
    %c0_i32_0 = arith.constant 0 : i32
    return %c0_i32, %arg0 : i32, i32
  }
  func.func @transform_3(%arg0: i32) -> (i32, i32) {
    %c0_i32 = arith.constant 0 : i32
    %c0_i32_0 = arith.constant 0 : i32
    return %arg0, %c0_i32 : i32, i32
  }
  func.func @transform_4(%arg0: i32) -> (i32, i32) {
    %c0_i32 = arith.constant 0 : i32
    %c0_i32_0 = arith.constant 0 : i32
    %c0_i32_1 = arith.constant 0 : i32
    return %c0_i32, %c0_i32_0 : i32, i32
  }
  func.func @transform_5(%arg0: i32) -> (i32, i32) {
    %c0_i32 = arith.constant 0 : i32
    %c0_i32_0 = arith.constant 0 : i32
    return %c0_i32, %arg0 : i32, i32
  }
  func.func @transform_6(%arg0: i32) -> (i32, i32) {
    %c0_i32 = arith.constant 0 : i32
    %c0_i32_0 = arith.constant 0 : i32
    %c0_i32_1 = arith.constant 0 : i32
    return %c0_i32, %c0_i32_0 : i32, i32
  }
}

</mosaic_0001>

<bundles_post_ra>
// kernel: _srrl_forward_impl.1
= control target key start
LH: loop header
LB: loop body
LE: loop exit
PB: predicated region body
PF: predicated region fallthrough
CT: control target
= control target key end

     0   :  { %12 = vsyncpa [#allocation3], 0  ;;  %s690_s0 = inlined_call_operand.vmem [shape: f32[8,128], index: 0, kind: input, shape index: {}]   ;;  %s691_s1 = inlined_call_operand.hbm [shape: f32[128,128], index: 1, kind: input, shape index: {}]   ;;  %s692_s2 = inlined_call_operand.vmem [shape: f32[2,128], index: 2, kind: input, shape index: {}]   ;;  %s693_s3 = inlined_call_operand.hbm [shape: f32[128,128], index: 3, kind: input, shape index: {}]   ;;  %s694_s4 = inlined_call_operand.vmem [shape: f32[1,128], index: 4, kind: input, shape index: {}]   ;;  %s695_s5 = inlined_call_operand.hbm [shape: f32[8,128], index: 5, kind: output, shape index: {0}]   ;;  %s696_s6 = inlined_call_operand.hbm [shape: f32[8,128], index: 6, kind: output, shape index: {1}]  }
   0x1   :  { %13 = vsyncpa [#allocation6], 0 }
   0x2   :  { %14 = vsyncpa [#allocation4], 0 }
   0x3   :  { %15 = vsyncpa [#allocation9], 0  ;;  %s573_s21 = smov [#allocation2]   ;;  %s477_s25 = scalar_lea.hbm %s691_s1, 2048 }
   0x4   :  { %s23_s22 = sshll.u32 %s573_s21, 4  ;;  %p478_p0 = scmp.ne.s32.totalorder %s691_s1, %s477_s25  ;;  %s24_s22 = int_to_ptr.vmem [resolvable:$true] %s23_s22 }
   0x5   :  { %p481_p1 = scmp.lt.u32.totalorder %s477_s25, %s691_s1 }
   0x7   :  { %p483_p2 = pnand %p481_p1, %p478_p0 }
   0x9   :  { %486 = shalt.err (!%p483_p2)
}
   0xa   :  { %s487_s30 = scalar_lea.vmem %s24_s22, 2048  ;;  %p492_p4 = scmp.lt.s32.totalorder %s24_s22, %s24_s22 }
   0xb   :  { %p488_p3 = scmp.ne.s32.totalorder %s24_s22, %s487_s30  ;;  %p493_p5 = scmp.lt.s32.totalorder %s487_s30, %s487_s30 }
   0xd   :  { %p494_p6 = por %p493_p5, %p492_p4 }
   0xf   :  { %p495_p7 = pnand %p494_p6, %p488_p3 }
  0x11   :  { %498 = shalt.err (!%p495_p7)
}
  0x12   :  { %s574_s7 = smov 128   ;;  %s575_s8 = smov 8  }
  0x13   :  { %29 = dma.hbm_to_vmem [thread:$0]  %s691_s1, 2048, %s24_s22, [#allocation3], %s574_s7, %s574_s7, %s575_s8  }
  0x14   :  { %s576_s11 = smov [#allocation5]   ;;  %s499_s15 = scalar_lea.hbm %s693_s3, 2048 }
  0x15   :  { %s37_s12 = sshll.u32 %s576_s11, 4  ;;  %p500_p8 = scmp.ne.s32.totalorder %s693_s3, %s499_s15  ;;  %s38_s12 = int_to_ptr.vmem [resolvable:$true] %s37_s12 }
  0x16   :  { %p503_p9 = scmp.lt.u32.totalorder %s499_s15, %s693_s3 }
  0x18   :  { %p505_p10 = pnand %p503_p9, %p500_p8 }
  0x1a   :  { %508 = shalt.err (!%p505_p10)
}
  0x1b   :  { %s509_s20 = scalar_lea.vmem %s38_s12, 2048  ;;  %p514_p12 = scmp.lt.s32.totalorder %s38_s12, %s38_s12 }
  0x1c   :  { %p510_p11 = scmp.ne.s32.totalorder %s38_s12, %s509_s20  ;;  %p515_p13 = scmp.lt.s32.totalorder %s509_s20, %s509_s20 }
  0x1e   :  { %p516_p0 = por %p515_p13, %p514_p12 }
  0x20   :  { %p517_p1 = pnand %p516_p0, %p510_p11 }
  0x22   :  { %520 = shalt.err (!%p517_p1)
}
  0x23   :  { %43 = dma.hbm_to_vmem [thread:$0]  %s693_s3, 2048, %s38_s12, [#allocation6], %s574_s7, %s574_s7, %s575_s8  }
  0x24   :  { %565 = dma.done.wait [#allocation3], 2048  }
  0x25   :  { %566 = vsyncadd [#allocation3], 4294965248 }
  0x26   :  { %567 = dma.done.wait [#allocation6], 2048  }
  0x27   :  { %568 = vsyncadd [#allocation6], 4294965248  ;;  %v577_v0 = vmov 0.0|0.0   ;;  %vm578_vm0 = vmmov 0   ;;  %v579_v1 = vmov 0.0   ;;  %v58_v2 = vld [vmem:[#allocation2] sm:$0xff] }
  0x28   :  { %418 = vmatprep.subr.bf16.mxu0 %v577_v0  ;;  %380 = vmatprep.mubr.msk.f32.mxu0 %vm578_vm0, %v579_v1  ;;  %v59_v3 = vld [vmem:[#allocation2 + $0x8] sm:$0xff]  ;;  %v60_v4 = vld [vmem:[#allocation2 + $0x10] sm:$0xff]  ;;  %v61_v6 = vld [vmem:[#allocation2 + $0x18] sm:$0xff]  ;;  %s580_s24 = smov [#allocation7]  }
  0x29   :  { %442 = vmatprep.subr.bf16.mxu1 %v577_v0  ;;  %415 = vmatprep.mubr.msk.f32.mxu1 %vm578_vm0, %v579_v1  ;;  %v419_v5 = vpack.c.bf16 %v59_v3, %v58_v2  ;;  %v422_v7 = vpack.c.bf16 %v61_v6, %v60_v4  ;;  %v62_v8 = vld [vmem:[#allocation2 + $0x20] sm:$0xff]  ;;  %v63_v9 = vld [vmem:[#allocation2 + $0x28] sm:$0xff]  ;;  %v64_v11 = vld [vmem:[#allocation2 + $0x30] sm:$0xff]  ;;  %v169_v6 = vlaneseq  ;;  %s289_s25 = sshll.u32 %s580_s24, 4  ;;  %s290_s25 = int_to_ptr.vmem [resolvable:$true] %s289_s25 }
  0x2a   :  { %v425_v10 = vpack.c.bf16 %v63_v9, %v62_v8  ;;  %v65_v12 = vld [vmem:[#allocation2 + $0x38] sm:$0xff]  ;;  %v66_v14 = vld [vmem:[#allocation2 + $0x40] sm:$0xff]  ;;  %v67_v15 = vld [vmem:[#allocation2 + $0x48] sm:$0xff]  ;;  %s521_s26 = scalar_lea.vmem %s290_s25, 128  ;;  %p526_p3 = scmp.lt.s32.totalorder %s290_s25, %s290_s25 }
  0x2b   :  { %420 = vmatpush3.bf16.msra.mxu0 %v419_v5  ;;  %v428_v13 = vpack.c.bf16 %v65_v12, %v64_v11  ;;  %v431_v16 = vpack.c.bf16 %v67_v15, %v66_v14  ;;  %v68_v17 = vld [vmem:[#allocation2 + $0x50] sm:$0xff]  ;;  %v69_v18 = vld [vmem:[#allocation2 + $0x58] sm:$0xff]  ;;  %v70_v20 = vld [vmem:[#allocation2 + $0x60] sm:$0xff]  ;;  %p522_p2 = scmp.ne.s32.totalorder %s290_s25, %s521_s26  ;;  %p527_p4 = scmp.lt.s32.totalorder %s521_s26, %s521_s26 }
  0x2c   :  { %421 = vmatprep.subr.bf16.mxu0 %v577_v0  ;;  %v434_v19 = vpack.c.bf16 %v69_v18, %v68_v17  ;;  %v71_v21 = vld [vmem:[#allocation2 + $0x68] sm:$0xff]  ;;  %v72_v23 = vld [vmem:[#allocation2 + $0x70] sm:$0xff]  ;;  %v73_v24 = vld [vmem:[#allocation2 + $0x78] sm:$0xff] }
  0x2d   :  { %v437_v22 = vpack.c.bf16 %v71_v21, %v70_v20  ;;  %v440_v25 = vpack.c.bf16 %v73_v24, %v72_v23  ;;  %v57_v26 = vld [vmem:[%s690_s0] sm:$0xff]  ;;  %v183_v28 = vld [vmem:[#allocation5 + $0x8] sm:$0xff]  ;;  %v184_v30 = vld [vmem:[#allocation5 + $0x10] sm:$0xff]  ;;  %p528_p5 = por %p527_p4, %p526_p3 }
  0x2e   :  { %v182_v27 = vld [vmem:[#allocation5] sm:$0xff]  ;;  %v185_v31 = vld [vmem:[#allocation5 + $0x18] sm:$0xff]  ;;  %v187_v34 = vld [vmem:[#allocation5 + $0x28] sm:$0xff] }
  0x2f   :  { %423 = vmatpush3.bf16.msra.mxu0 %v422_v7  ;;  %v443_v29 = vpack.c.bf16 %v183_v28, %v182_v27  ;;  %v446_v32 = vpack.c.bf16 %v185_v31, %v184_v30  ;;  %v186_v33 = vld [vmem:[#allocation5 + $0x20] sm:$0xff]  ;;  %v188_v36 = vld [vmem:[#allocation5 + $0x30] sm:$0xff]  ;;  %v189_v37 = vld [vmem:[#allocation5 + $0x38] sm:$0xff]  ;;  %v170_v7 = vshrl.u32 %v169_v6, 7  ;;  %p529_p6 = pnand %p528_p5, %p522_p2 }
  0x30   :  { %424 = vmatprep.subr.bf16.mxu0 %v577_v0  ;;  %v449_v35 = vpack.c.bf16 %v187_v34, %v186_v33  ;;  %v452_v38 = vpack.c.bf16 %v189_v37, %v188_v36  ;;  %v190_v39 = vld [vmem:[#allocation5 + $0x40] sm:$0xff]  ;;  %v191_v40 = vld [vmem:[#allocation5 + $0x48] sm:$0xff]  ;;  %v192_v42 = vld [vmem:[#allocation5 + $0x50] sm:$0xff] }
  0x31   :  { %444 = vmatpush3.bf16.msra.mxu1 %v443_v29  ;;  %v455_v41 = vpack.c.bf16 %v191_v40, %v190_v39  ;;  %v193_v43 = vld [vmem:[#allocation5 + $0x58] sm:$0xff]  ;;  %v194_v45 = vld [vmem:[#allocation5 + $0x60] sm:$0xff]  ;;  %v195_v46 = vld [vmem:[#allocation5 + $0x68] sm:$0xff]  ;;  %v171_v11 = vsub.s32 0, %v170_v7  ;;  %v176_v15 = vsub.s32 1, %v170_v7 }
  0x32   :  { %445 = vmatprep.subr.bf16.mxu1 %v577_v0  ;;  %v458_v44 = vpack.c.bf16 %v193_v43, %v192_v42  ;;  %v196_v47 = vld [vmem:[#allocation5 + $0x70] sm:$0xff]  ;;  %v461_v48 = vpack.c.bf16 %v195_v46, %v194_v45  ;;  %v197_v49 = vld [vmem:[#allocation5 + $0x78] sm:$0xff]  ;;  %v162_v8 = vld [vmem:[%s692_s2] sm:$0x3] }
  0x33   :  { %426 = vmatpush3.bf16.msra.mxu0 %v425_v10  ;;  %v464_v50 = vpack.c.bf16 %v197_v49, %v196_v47 }
  0x34   :  { %427 = vmatprep.subr.bf16.mxu0 %v577_v0 }
  0x35   :  { %447 = vmatpush3.bf16.msra.mxu1 %v446_v32 }
  0x36   :  { %448 = vmatprep.subr.bf16.mxu1 %v577_v0 }
  0x37   :  { %429 = vmatpush3.bf16.msra.mxu0 %v428_v13 }
  0x38   :  { %430 = vmatprep.subr.bf16.mxu0 %v577_v0 }
  0x39   :  { %450 = vmatpush3.bf16.msra.mxu1 %v449_v35 }
  0x3a   :  { %451 = vmatprep.subr.bf16.mxu1 %v577_v0 }
  0x3b   :  { %432 = vmatpush3.bf16.msra.mxu0 %v431_v16 }
  0x3c   :  { %433 = vmatprep.subr.bf16.mxu0 %v577_v0 }
  0x3d   :  { %453 = vmatpush3.bf16.msra.mxu1 %v452_v38 }
  0x3e   :  { %454 = vmatprep.subr.bf16.mxu1 %v577_v0 }
  0x3f   :  { %435 = vmatpush3.bf16.msra.mxu0 %v434_v19 }
  0x40   :  { %436 = vmatprep.subr.bf16.mxu0 %v577_v0 }
  0x41   :  { %456 = vmatpush3.bf16.msra.mxu1 %v455_v41 }
  0x42   :  { %457 = vmatprep.subr.bf16.mxu1 %v577_v0 }
  0x43   :  { %438 = vmatpush3.bf16.msra.mxu0 %v437_v22 }
  0x44   :  { %439 = vmatprep.subr.bf16.mxu0 %v577_v0 }
  0x45   :  { %459 = vmatpush3.bf16.msra.mxu1 %v458_v44 }
  0x46   :  { %460 = vmatprep.subr.bf16.mxu1 %v577_v0 }
  0x47   :  { %441 = vmatpush3.bf16.msra.mxu0 %v440_v25 }
  0x49   :  { %462 = vmatpush3.bf16.msra.mxu1 %v461_v48 }
  0x4a   :  { %381 = vmatmul.mubr.f32.vlgmr.msra.gmra.mrb[0].mxu0 %v57_v26  ;;  %463 = vmatprep.subr.bf16.mxu1 %v577_v0 }
  0x4d   :  { %465 = vmatpush3.bf16.msra.mxu1 %v464_v50 }
 0x11d   :  { %v140_v51 = vpop.f32.mrb[0].mxu0 }
 0x11e   :  { %v144_v52 = vrot.slane %v140_v51, 4  ;;  %v382_v53 = vpop.f32.mrb[1].mxu0 }
 0x120   :  { %v145_v54 = vadd.f32 %v144_v52, %v140_v51 }
 0x122   :  { %v146_v55 = vrot.slane %v145_v54, 2 }
 0x124   :  { %v147_v56 = vadd.f32 %v146_v55, %v145_v54 }
 0x126   :  { %v148_v57 = vrot.slane %v147_v56, 1 }
 0x128   :  { %v149_v58 = vadd.f32 %v148_v57, %v147_v56 }
 0x12a   :  { %v150_v59 = vmul.f32 0.125, %v149_v58 }
 0x12c   :  { %v151_v60 = vsub.f32 %v140_v51, %v150_v59 }
 0x12e   :  { %v152_v61 = vmul.f32 %v151_v60, %v151_v60 }
 0x130   :  { %v153_v62 = vrot.slane %v152_v61, 4 }
 0x132   :  { %v154_v63 = vadd.f32 %v153_v62, %v152_v61 }
 0x134   :  { %v155_v1 = vrot.slane %v154_v63, 2 }
 0x136   :  { %v156_v2 = vadd.f32 %v155_v1, %v154_v63 }
 0x138   :  { %v157_v3 = vrot.slane %v156_v2, 1 }
 0x13a   :  { %v158_v4 = vadd.f32 %v157_v3, %v156_v2 }
 0x13c   :  { %v159_v5 = vmul.f32 0.125, %v158_v4 }
 0x13e   :  { %v160_v0 = vadd.f32 1e-05, %v159_v5 }
 0x140   :  { %475 = vrsqrt.f32 %v160_v0 }
 0x14a   :  { %v476_v9 = vpop.eup %475 }
 0x14b   :  { %v163_v10 = vmul.f32 %v476_v9, %v162_v8 }
 0x14d   :  { %v164_v12 = vmul.f32 %v163_v10, %v150_v59  ;;  %v172_v14 = vrot.slane %v163_v10, %v171_v11 }
 0x14f   :  { %v166_v13 = vrot.slane %v164_v12, 7  ;;  %v173_v17 = vmul.f32 %v172_v14, %v140_v51 }
 0x151   :  { %v168_v16 = vsub.f32 %v162_v8, %v166_v13 }
 0x153   :  { %v177_v18 = vrot.slane %v168_v16, %v176_v15 }
 0x155   :  { %v178_v19 = vadd.f32 %v177_v18, %v173_v17 }
 0x157   :  { %v179_v20 = vmax.f32 %v178_v19, 0.0 }
 0x159   :  { %416 = vmatmul.mubr.f32.vlgmr.msra.gmra.mrb[0].mxu1 %v179_v20  ;;  %180 = vst [vmem:[#allocation7] sm:$0xff] %v179_v20 }
 0x15a   :  { %532 = shalt.err (!%p529_p6)
}
 0x15b   :  { %s533_s28 = scalar_lea.hbm %s695_s5, 128 }
 0x15c   :  { %p534_p7 = scmp.ne.s32.totalorder %s695_s5, %s533_s28  ;;  %p537_p8 = scmp.lt.u32.totalorder %s533_s28, %s695_s5 }
 0x15e   :  { %p539_p9 = pnand %p537_p8, %p534_p7 }
 0x160   :  { %542 = shalt.err (!%p539_p9)
}
 0x161   :  { %292 = dma.vmem_to_hbm [thread:$0]  %s290_s25, 128, %s695_s5, [#allocation4]   ;;  %v313_v22 = vld [vmem:[%s694_s4] ss:$0 sm:$0xff] }
 0x162   :  { %s581_s13 = smov [#allocation8]  }
 0x163   :  { %s299_s14 = sshll.u32 %s581_s13, 4  ;;  %s300_s14 = int_to_ptr.vmem [resolvable:$true] %s299_s14 }
 0x164   :  { %s543_s15 = scalar_lea.vmem %s300_s14, 128  ;;  %p548_p11 = scmp.lt.s32.totalorder %s300_s14, %s300_s14 }
 0x165   :  { %p544_p10 = scmp.ne.s32.totalorder %s300_s14, %s543_s15  ;;  %p549_p12 = scmp.lt.s32.totalorder %s543_s15, %s543_s15 }
 0x167   :  { %p550_p13 = por %p549_p12, %p548_p11 }
 0x169   :  { %p551_p0 = pnand %p550_p13, %p544_p10 }
 0x22c   :  { %v264_v21 = vpop.f32.mrb[0].mxu1 }
 0x22d   :  { %v417_v23 = vpop.f32.mrb[1].mxu1  ;;  %v281_v24 = vadd.f32 %v313_v22, %v264_v21 }
 0x22f   :  { %282 = vst [vmem:[#allocation8] sm:$0xff] %v281_v24 }
 0x230   :  { %554 = shalt.err (!%p551_p0)
}
 0x231   :  { %s555_s17 = scalar_lea.hbm %s696_s6, 128 }
 0x232   :  { %p556_p1 = scmp.ne.s32.totalorder %s696_s6, %s555_s17  ;;  %p559_p2 = scmp.lt.u32.totalorder %s555_s17, %s696_s6 }
 0x234   :  { %p561_p3 = pnand %p559_p2, %p556_p1 }
 0x236   :  { %564 = shalt.err (!%p561_p3)
}
 0x237   :  { %302 = dma.vmem_to_hbm [thread:$0]  %s300_s14, 128, %s696_s6, [#allocation9]  }
 0x238   :  { %569 = dma.done.wait [#allocation4], 128  }
 0x239   :  { %570 = vsyncadd [#allocation4], 4294967168 }
 0x23a   :  { %571 = dma.done.wait [#allocation9], 128  }
 0x23b   :  { %572 = vsyncadd [#allocation9], 4294967168 }
 0x23c   :  { %309 = vsyncpa [#allocation3], 1 }
 0x23d   :  { %310 = vsyncpa [#allocation6], 1 }
 0x23e   :  { %311 = vsyncpa [#allocation4], 1 }
 0x23f   :  { %312 = vsyncpa [#allocation9], 1 }

</bundles_post_ra>
